<compile_context>
chip_gen: v7x
topology: tpu7x:2x2x1
jax: 0.10.0
libtpu: 0.0.40
codegen_flags: <defaults>
</compile_context>

<pallas_src>
import functools
import math

import jax
import jax.numpy as jnp
from jax.experimental import pallas as pl
from jax.experimental.pallas import tpu as pltpu


# -----------------------------------------------------------------------------
# Kernel 1: fused EMA parameter blend   out = w * ema + (1 - w) * param
# -----------------------------------------------------------------------------
_BLEND_LANES = 512          # lane width of a blend tile (multiple of 128)
_BLEND_MAX_ROWS = 512       # max sublane rows per tile -> 512*512*4B = 1 MiB/tile


def _ema_blend_kernel(ema_ref, p_ref, out_ref, *, ema_weight, one_minus_ema_weight):
    # Blend in f32 so small (1 - w) updates are not lost in low-precision dtypes.
    e = ema_ref[...].astype(jnp.float32)
    p = p_ref[...].astype(jnp.float32)
    out_ref[...] = (ema_weight * e + one_minus_ema_weight * p).astype(out_ref.dtype)


def fused_ema_blend(ema_flat: jax.Array, param_flat: jax.Array,
                    ema_weight: float) -> jax.Array:
    """Blend two 1-D flattened parameter buffers with a tiled, pipelined kernel."""
    total = ema_flat.shape[0]
    lanes = _BLEND_LANES
    n_rows_raw = pl.cdiv(total, lanes)
    # Block rows: multiple of 8 (sublane constraint), capped for VMEM portability.
    block_rows = min(_BLEND_MAX_ROWS, ((n_rows_raw + 7) // 8) * 8)
    n_rows = ((n_rows_raw + block_rows - 1) // block_rows) * block_rows
    pad = n_rows * lanes - total

    ema2d = jnp.pad(ema_flat, (0, pad)).reshape(n_rows, lanes)
    p2d = jnp.pad(param_flat, (0, pad)).reshape(n_rows, lanes)

    out = pl.pallas_call(
        functools.partial(
            _ema_blend_kernel,
            ema_weight=float(ema_weight),
            one_minus_ema_weight=float(1.0 - ema_weight),
        ),
        out_shape=jax.ShapeDtypeStruct((n_rows, lanes), ema_flat.dtype),
        grid_spec=pltpu.PrefetchScalarGridSpec(
            num_scalar_prefetch=0,
            grid=(n_rows // block_rows,),
            in_specs=[
                pl.BlockSpec((block_rows, lanes), lambda i: (i, 0)),
                pl.BlockSpec((block_rows, lanes), lambda i: (i, 0)),
            ],
            out_specs=pl.BlockSpec((block_rows, lanes), lambda i: (i, 0)),
        ),
        compiler_params=pltpu.CompilerParams(
            dimension_semantics=("parallel",),
            vmem_limit_bytes=32 * 1024 * 1024,
        ),
        input_output_aliases={0: 0},   # update the EMA buffer in place
    )(ema2d, p2d)

    return out.reshape(-1)[:total]


# -----------------------------------------------------------------------------
# Kernel 2: forward of the wrapped model (1x1 conv == per-pixel channel matmul)
#           Stays in NCHW: per image  y = W (Cout,Cin) @ x (Cin, H*W) + b
# -----------------------------------------------------------------------------
def _pointwise_conv_kernel(x_ref, w_ref, b_ref, o_ref):
    # x: (1, Cin, THW), w: (Cout, Cin), b: (Cout, 1)  ->  o: (1, Cout, THW)
    x = x_ref[0].astype(jnp.float32)        # (Cin, THW)
    w = w_ref[...].astype(jnp.float32)      # (Cout, Cin)
    b = b_ref[...].astype(jnp.float32)      # (Cout, 1), broadcast along lanes
    cin = x.shape[0]
    cout = w.shape[0]
    thw = x.shape[1]
    if cin <= 8:
        # Tiny contraction: unrolled VPU broadcast multiply-accumulate on
        # lane-dense (Cout, THW) tiles avoids wasting the MXU on a KxN = 4x8 op.
        acc = jnp.zeros((cout, thw), jnp.float32)
        for c in range(cin):                      # static unroll (cin is small)
            acc = acc + w[:, c:c + 1] * x[c:c + 1, :]
    else:
        acc = jnp.dot(w, x, preferred_element_type=jnp.float32)
    o_ref[0] = (acc + b).astype(o_ref.dtype)


def _pick_hw_tile(hw: int) -> int:
    """Largest multiple-of-128 divisor of hw (capped), else the full extent."""
    if hw % 128 != 0:
        return hw
    for cand in (2048, 1024, 512, 256, 128):
        if hw % cand == 0:
            return cand
    return hw


def pointwise_conv_nchw(x_nchw: jax.Array, weight: jax.Array, bias: jax.Array) -> jax.Array:
    """1x1 Conv2d forward.  x: [N, Cin, H, W], weight: [Cout, Cin], bias: [Cout]."""
    n, cin, h, w = x_nchw.shape
    cout = weight.shape[0]
    hw = h * w
    thw = _pick_hw_tile(hw)

    # Reshapes only merge/split trailing dims: no transpose, no extra HBM pass.
    x3 = x_nchw.reshape(n, cin, hw)
    b2 = bias.reshape(cout, 1)

    out = pl.pallas_call(
        _pointwise_conv_kernel,
        out_shape=jax.ShapeDtypeStruct((n, cout, hw), x_nchw.dtype),
        grid_spec=pltpu.PrefetchScalarGridSpec(
            num_scalar_prefetch=0,
            grid=(n, hw // thw),
            in_specs=[
                pl.BlockSpec((1, cin, thw), lambda i, j: (i, 0, j)),
                pl.BlockSpec((cout, cin), lambda i, j: (0, 0)),   # resident
                pl.BlockSpec((cout, 1), lambda i, j: (0, 0)),     # resident
            ],
            out_specs=pl.BlockSpec((1, cout, thw), lambda i, j: (i, 0, j)),
        ),
        compiler_params=pltpu.CompilerParams(
            dimension_semantics=("parallel", "parallel"),
            vmem_limit_bytes=32 * 1024 * 1024,
        ),
    )(x3, weight, b2)

    return out.reshape(n, cout, h, w)


# -----------------------------------------------------------------------------
# Python glue mirroring the PyTorch EMA module
# -----------------------------------------------------------------------------
class SimpleModel:
    """Synthetic wrapped model: a single 1x1 Conv2d(Cin -> Cout) with bias."""

    def __init__(self, params):
        # params: dict with 'weight' [Cout, Cin] and 'bias' [Cout]
        self.params = dict(params)

    def parameters(self):
        return [self.params[k] for k in sorted(self.params)]

    def state_dict(self):
        return dict(self.params)

    def load_state_dict(self, sd):
        self.params = dict(sd)

    def __call__(self, x_nchw):
        return pointwise_conv_nchw(x_nchw, self.params["weight"], self.params["bias"])


class EMA:
    def __init__(self, model: SimpleModel, configuration: dict):
        # deepcopy-equivalent: copy the parameter dict (arrays are immutable in JAX)
        self.ema_model = SimpleModel(model.state_dict())
        self.ema_weight = configuration["weight"]
        self.one_minus_ema_weight = 1.0 - self.ema_weight
        self.warmup_steps = configuration["warm_up_steps"]
        self._current_step = 0

    def ema_step(self, model: SimpleModel):
        # TODO(synk): warmup/step-counting is host-side Python control flow (as in PyTorch).
        self._current_step += 1
        if self._current_step < self.warmup_steps:
            return
        elif self._current_step == self.warmup_steps:
            self.ema_model.load_state_dict(model.state_dict())
            return

        # Fuse all parameters into ONE flat buffer -> single tiled, aliased kernel call.
        names = sorted(self.ema_model.params)
        shapes = [self.ema_model.params[n].shape for n in names]
        sizes = [int(math.prod(s)) for s in shapes]
        ema_dtype = self.ema_model.params[names[0]].dtype
        ema_flat = jnp.concatenate(
            [self.ema_model.params[n].reshape(-1) for n in names])
        p_flat = jnp.concatenate(
            [model.params[n].reshape(-1).astype(ema_dtype) for n in names])

        new_flat = fused_ema_blend(ema_flat, p_flat, self.ema_weight)

        new_params = {}
        off = 0
        for nm, shp, sz in zip(names, shapes, sizes):
            new_params[nm] = new_flat[off:off + sz].reshape(shp)
            off += sz
        self.ema_model.params = new_params

    def apply_to_model(self, model: SimpleModel):
        model.load_state_dict(self.ema_model.state_dict())

    def __call__(self, x):
        return self.forward(x)

    def forward(self, x):
        return self.ema_model(x)


# -----------------------------------------------------------------------------
# Demo / correctness check
# -----------------------------------------------------------------------------
if __name__ == "__main__":
    key = jax.random.PRNGKey(0)
    k_x, k_w, k_b, k_w2, k_b2 = jax.random.split(key, 5)

    N, CIN, COUT, H, W = 2, 4, 8, 16, 16

    # Deterministic synthetic parameters (no checkpoint loading).
    w0 = jax.random.normal(k_w, (COUT, CIN), dtype=jnp.float32) * 0.1
    b0 = jax.random.normal(k_b, (COUT,), dtype=jnp.float32) * 0.1
    model = SimpleModel({"weight": w0, "bias": b0})

    config = {"weight": 0.99, "warm_up_steps": 2}
    ema = EMA(model, config)

    x = jax.random.normal(k_x, (N, CIN, H, W), dtype=jnp.float32)

    # Simulate training steps where the live model's params drift.
    w1 = w0 + 0.05 * jax.random.normal(k_w2, w0.shape, dtype=jnp.float32)
    b1 = b0 + 0.05 * jax.random.normal(k_b2, b0.shape, dtype=jnp.float32)

    ema.ema_step(model)                       # step 1: < warmup, no-op
    ema.ema_step(model)                       # step 2: == warmup, copy state
    model.load_state_dict({"weight": w1, "bias": b1})
    ema.ema_step(model)                       # step 3: fused blend via Pallas kernel

    y = ema(x)                                # forward via Pallas conv kernel
    y = jax.block_until_ready(y)

    # Reference computation in plain JAX (semantics check).
    ema_w_ref = config["weight"] * w0 + (1.0 - config["weight"]) * w1
    ema_b_ref = config["weight"] * b0 + (1.0 - config["weight"]) * b1
    y_ref = (
        jnp.einsum("nchw,oc->nohw", x, ema_w_ref)
        + ema_b_ref.reshape(1, COUT, 1, 1)
    )

    assert y.shape == (N, COUT, H, W)
    assert jnp.allclose(jnp.asarray(ema.ema_model.params["weight"]), ema_w_ref,
                        atol=1e-6, rtol=1e-6), "EMA blend mismatch vs reference"
    assert jnp.allclose(y, y_ref, atol=1e-4, rtol=1e-4), "forward mismatch vs reference"

    print("KERNEL_OK")
</pallas_src>

<mosaic_0001>
module attributes {stable_mosaic.version = 11 : i64} {
  func.func @_ema_blend_kernel(%arg0: i32, %arg1: memref<8x512xf32, #tpu.memory_space<vmem>>, %arg2: memref<8x512xf32, #tpu.memory_space<vmem>>, %arg3: memref<8x512xf32, #tpu.memory_space<vmem>>) attributes {dimension_semantics = [#tpu.dimension_semantics<parallel>], iteration_bounds = array<i64: 1>, scalar_prefetch = 0 : i64, scratch_operands = 0 : i64, tpu.core_type = #tpu.core_type<tc>, window_params = [{transform_indices = @transform_0, window_bounds = array<i64: 8, 512>}, {transform_indices = @transform_1, window_bounds = array<i64: 8, 512>}, {transform_indices = @transform_2, window_bounds = array<i64: 8, 512>}]} {
    %c0 = arith.constant 0 : index
    %c0_0 = arith.constant 0 : index
    %0 = vector.load %arg1[%c0, %c0_0] : memref<8x512xf32, #tpu.memory_space<vmem>>, vector<8x512xf32>
    %c0_1 = arith.constant 0 : index
    %c0_2 = arith.constant 0 : index
    %1 = vector.load %arg2[%c0_1, %c0_2] : memref<8x512xf32, #tpu.memory_space<vmem>>, vector<8x512xf32>
    %cst = arith.constant 9.900000e-01 : f32
    %2 = vector.broadcast %cst : f32 to vector<8x512xf32>
    %3 = arith.mulf %2, %0 : vector<8x512xf32>
    %cst_3 = arith.constant 0.00999999977 : f32
    %4 = vector.broadcast %cst_3 : f32 to vector<8x512xf32>
    %5 = arith.mulf %4, %1 : vector<8x512xf32>
    %6 = arith.addf %3, %5 : vector<8x512xf32>
    %c0_4 = arith.constant 0 : index
    %c0_5 = arith.constant 0 : index
    %7 = vector.load %arg3[%c0_4, %c0_5] : memref<8x512xf32, #tpu.memory_space<vmem>>, vector<8x512xf32>
    tpu.vector_store %arg3[%c0_4, %c0_5], %6 {strides = array<i32>} : memref<8x512xf32, #tpu.memory_space<vmem>>, vector<8x512xf32>,
    return
  }
  func.func @transform_0(%arg0: i32) -> (i32, i32) {
    %c0_i32 = arith.constant 0 : i32
    %c0_i32_0 = arith.constant 0 : i32
    return %arg0, %c0_i32 : i32, i32
  }
  func.func @transform_1(%arg0: i32) -> (i32, i32) {
    %c0_i32 = arith.constant 0 : i32
    %c0_i32_0 = arith.constant 0 : i32
    return %arg0, %c0_i32 : i32, i32
  }
  func.func @transform_2(%arg0: i32) -> (i32, i32) {
    %c0_i32 = arith.constant 0 : i32
    %c0_i32_0 = arith.constant 0 : i32
    return %arg0, %c0_i32 : i32, i32
  }
}

</mosaic_0001>

<bundles_post_ra>
// kernel: tpu_custom_call.1
= control target key start
LH: loop header
LB: loop body
LE: loop exit
PB: predicated region body
PF: predicated region fallthrough
CT: control target
= control target key end

     0   :  { %7 = vsyncpa [#allocation3], 0  ;;  %s166_s0 = inlined_call_operand.hbm [shape: f32[8,512], index: 0, kind: input, shape index: {}, may-alias: {0,2}]   ;;  %s167_s1 = inlined_call_operand.vmem [shape: f32[8,512], index: 1, kind: input, shape index: {}]   ;;  %s168_s2 = inlined_call_operand.hbm [shape: f32[8,512], index: 2, kind: output, shape index: {}, may-alias: {0,2}]  }
   0x1   :  { %8 = vsyncpa [#allocation4], 0  ;;  %s113_s9 = smov [#allocation2]   ;;  %s65_s13 = scalar_lea.hbm %s166_s0, 512 }
   0x2   :  { %s15_s10 = sshll.u32 %s113_s9, 4  ;;  %p66_p0 = scmp.ne.s32.totalorder %s166_s0, %s65_s13  ;;  %s16_s10 = int_to_ptr.vmem [resolvable:$true] %s15_s10 }
   0x3   :  { %p69_p1 = scmp.lt.u32.totalorder %s65_s13, %s166_s0 }
   0x5   :  { %p71_p2 = pnand %p69_p1, %p66_p0 }
   0x7   :  { %74 = shalt.err (!%p71_p2)
}
   0x8   :  { %s75_s18 = scalar_lea.vmem %s16_s10, 512  ;;  %p80_p4 = scmp.lt.s32.totalorder %s16_s10, %s16_s10 }
   0x9   :  { %p76_p3 = scmp.ne.s32.totalorder %s16_s10, %s75_s18  ;;  %p81_p5 = scmp.lt.s32.totalorder %s75_s18, %s75_s18 }
   0xb   :  { %p82_p6 = por %p81_p5, %p80_p4 }
   0xd   :  { %p83_p7 = pnand %p82_p6, %p76_p3 }
   0xf   :  { %86 = shalt.err (!%p83_p7)
}
  0x10   :  { %18 = dma.hbm_to_vmem [thread:$0]  %s166_s0, 512, %s16_s10, [#allocation3]  }
  0x11   :  { %109 = dma.done.wait [#allocation3], 512  }
  0x12   :  { %110 = vsyncadd [#allocation3], 4294966784  ;;  %v24_v0 = vld [vmem:[#allocation2] sm:$0xff]  ;;  %v25_v2 = vld [vmem:[#allocation2 + $0x8] sm:$0xff]  ;;  %s114_s28 = smov [#allocation5]  }
  0x13   :  { %v28_v1 = vld [vmem:[%s167_s1] sm:$0xff]  ;;  %v32_v3 = vmul.f32 0.99, %v24_v0  ;;  %v29_v5 = vld [vmem:[%s167_s1 + $0x8] sm:$0xff]  ;;  %v26_v6 = vld [vmem:[#allocation2 + $0x10] sm:$0xff]  ;;  %s54_s29 = sshll.u32 %s114_s28, 4  ;;  %s55_s29 = int_to_ptr.vmem [resolvable:$true] %s54_s29 }
  0x14   :  { %v36_v4 = vmul.f32 0.01, %v28_v1  ;;  %v33_v7 = vmul.f32 0.99, %v25_v2  ;;  %v37_v8 = vmul.f32 0.01, %v29_v5  ;;  %p92_p9 = scmp.lt.s32.totalorder %s55_s29, %s55_s29 }
  0x15   :  { %v30_v9 = vld [vmem:[%s167_s1 + $0x10] sm:$0xff]  ;;  %v27_v10 = vld [vmem:[#allocation2 + $0x18] sm:$0xff]  ;;  %v34_v12 = vmul.f32 0.99, %v26_v6  ;;  %s87_s30 = scalar_lea.vmem %s55_s29, 512 }
  0x16   :  { %v40_v11 = vadd.f32 %v36_v4, %v32_v3  ;;  %v38_v13 = vmul.f32 0.01, %v30_v9  ;;  %v31_v14 = vld [vmem:[%s167_s1 + $0x18] sm:$0xff]  ;;  %v41_v15 = vadd.f32 %v37_v8, %v33_v7  ;;  %v35_v16 = vmul.f32 0.99, %v27_v10  ;;  %p88_p8 = scmp.ne.s32.totalorder %s55_s29, %s87_s30  ;;  %p93_p10 = scmp.lt.s32.totalorder %s87_s30, %s87_s30 }
  0x17   :  { %v39_v17 = vmul.f32 0.01, %v31_v14 }
  0x18   :  { %44 = vst [vmem:[#allocation5] sm:$0xff] %v40_v11  ;;  %v42_v18 = vadd.f32 %v38_v13, %v34_v12  ;;  %45 = vst [vmem:[#allocation5 + $0x8] sm:$0xff] %v41_v15  ;;  %p94_p11 = por %p93_p10, %p92_p9 }
  0x19   :  { %v43_v19 = vadd.f32 %v39_v17, %v35_v16 }
  0x1a   :  { %46 = vst [vmem:[#allocation5 + $0x10] sm:$0xff] %v42_v18  ;;  %p95_p12 = pnand %p94_p11, %p88_p8 }
  0x1b   :  { %47 = vst [vmem:[#allocation5 + $0x18] sm:$0xff] %v43_v19 }
  0x1c   :  { %98 = shalt.err (!%p95_p12)
}
  0x1d   :  { %s99_s4 = scalar_lea.hbm %s168_s2, 512 }
  0x1e   :  { %p100_p13 = scmp.ne.s32.totalorder %s168_s2, %s99_s4  ;;  %p103_p0 = scmp.lt.u32.totalorder %s99_s4, %s168_s2 }
  0x20   :  { %p105_p1 = pnand %p103_p0, %p100_p13 }
  0x22   :  { %108 = shalt.err (!%p105_p1)
}
  0x23   :  { %57 = dma.vmem_to_hbm [thread:$0]  %s55_s29, 512, %s168_s2, [#allocation4]  }
  0x24   :  { %111 = dma.done.wait [#allocation4], 512  }
  0x25   :  { %112 = vsyncadd [#allocation4], 4294966784 }
  0x26   :  { %61 = vsyncpa [#allocation3], 1 }
  0x27   :  { %62 = vsyncpa [#allocation4], 1 }

</bundles_post_ra>
